<compile_context>
chip_gen: v7x
topology: tpu7x:2x2x1
jax: 0.10.0
libtpu: 0.0.40
codegen_flags: <defaults>
</compile_context>

<pallas_src>
import functools

import jax
import jax.numpy as jnp
from jax import lax
from jax.experimental import pallas as pl
from jax.experimental.pallas import tpu as pltpu

_EPS = 1e-5
_SLOPE = 0.2


def _leaky_relu(x, slope=_SLOPE):
    return jnp.where(x >= 0, x, slope * x)


def _stats_kernel(x_ref, w1_ref, b1_ref, w2_ref, sum_ref, sumsq_ref):
    """Pass 1: accumulate per-channel sum / sumsq of conv2 output over all pixels."""

    @pl.when(jnp.logical_and(pl.program_id(0) == 0, pl.program_id(1) == 0))
    def _():
        sum_ref[...] = jnp.zeros_like(sum_ref)
        sumsq_ref[...] = jnp.zeros_like(sumsq_ref)

    x = x_ref[...]                                                       # (Cin, Tp)
    h1 = jnp.dot(w1_ref[...], x, preferred_element_type=jnp.float32) + b1_ref[...]
    h1 = _leaky_relu(h1)                                                 # (ndf, Tp)
    h2 = jnp.dot(w2_ref[...], h1, preferred_element_type=jnp.float32)   # (2*ndf, Tp)

    # Lane-axis reductions -> (2*ndf, 1); accumulated across the whole grid.
    sum_ref[...] += jnp.sum(h2, axis=-1, keepdims=True)
    sumsq_ref[...] += jnp.sum(h2 * h2, axis=-1, keepdims=True)


def _apply_kernel(x_ref, w1_ref, b1_ref, w2_ref, scale_ref, shift_ref, w3_ref,
                  o_ref):
    """Pass 2: recompute conv1/conv2, apply folded BN + LeakyReLU, then conv3."""
    x = x_ref[...]                                                       # (Cin, Tp)
    h1 = jnp.dot(w1_ref[...], x, preferred_element_type=jnp.float32) + b1_ref[...]
    h1 = _leaky_relu(h1)
    h2 = jnp.dot(w2_ref[...], h1, preferred_element_type=jnp.float32)   # (C2, Tp)

    # BatchNorm folded into a single per-channel affine (scale, shift).
    h2n = _leaky_relu(h2 * scale_ref[...] + shift_ref[...])

    # conv3 has a single output channel: per-channel scale + sublane reduction
    # (VPU/XLU) instead of an MXU matmul with N=1.  Output is lane-dense (1, Tp).
    o_ref[...] = jnp.sum(h2n * w3_ref[...], axis=0, keepdims=True)


def _pick_pixel_tile(hw, max_tile):
    """Largest multiple of 128 that divides hw and is <= max_tile, else hw."""
    if hw <= max_tile:
        return hw
    t = (max_tile // 128) * 128
    while t >= 128:
        if hw % t == 0:
            return t
        t -= 128
    return hw  # full row: block == full dim is always legal


def pixel_discriminator(x_nchw, params, *, max_tile_p=2048):
    """x_nchw: (N, Cin, H, W) float32 -> (N, 1, H, W) float32."""
    w1, b1, w2, gamma, beta, w3 = params
    n, cin, h, w = x_nchw.shape
    hw = h * w
    c2 = w2.shape[0]

    tile_p = _pick_pixel_tile(hw, max_tile_p)
    num_tiles = hw // tile_p

    # Channel-major view of NCHW: a pure reshape, no extra HBM transpose pass.
    x_cp = x_nchw.reshape(n, cin, hw)

    const = lambda i, j: (0, 0)

    # ---- Pass 1: global BatchNorm statistics of conv2 output -----------------
    sum_c, sumsq_c = pl.pallas_call(
        _stats_kernel,
        out_shape=(jax.ShapeDtypeStruct((c2, 1), jnp.float32),
                   jax.ShapeDtypeStruct((c2, 1), jnp.float32)),
        grid_spec=pltpu.PrefetchScalarGridSpec(
            num_scalar_prefetch=0,
            grid=(n, num_tiles),
            in_specs=[
                pl.BlockSpec((None, cin, tile_p), lambda i, j: (i, 0, j)),
                pl.BlockSpec(w1.shape, const),
                pl.BlockSpec(b1.shape, const),
                pl.BlockSpec(w2.shape, const),
            ],
            out_specs=(pl.BlockSpec((c2, 1), const),
                       pl.BlockSpec((c2, 1), const)),
        ),
        compiler_params=pltpu.CompilerParams(
            dimension_semantics=("arbitrary", "arbitrary")),
    )(x_cp, w1, b1, w2)

    # Fold BN (training-mode biased stats over N*H*W, eps=1e-5) into one affine.
    # TODO(synk): single-pass sum/sumsq can lose precision for very large N*H*W;
    # validated fine at these scales against the f32 reference.
    count = jnp.float32(n * hw)
    mean = sum_c[:, 0] / count                                        # (C2,)
    var = jnp.maximum(sumsq_c[:, 0] / count - mean * mean, 0.0)
    scale = gamma[:, 0] * lax.rsqrt(var + _EPS)
    shift = beta[:, 0] - mean * scale
    scale = scale.reshape(c2, 1)
    shift = shift.reshape(c2, 1)

    # ---- Pass 2: per-pixel MLP with folded BN (fully parallel grid) ----------
    out_cp = pl.pallas_call(
        _apply_kernel,
        out_shape=jax.ShapeDtypeStruct((n, 1, hw), jnp.float32),
        grid_spec=pltpu.PrefetchScalarGridSpec(
            num_scalar_prefetch=0,
            grid=(n, num_tiles),
            in_specs=[
                pl.BlockSpec((None, cin, tile_p), lambda i, j: (i, 0, j)),
                pl.BlockSpec(w1.shape, const),
                pl.BlockSpec(b1.shape, const),
                pl.BlockSpec(w2.shape, const),
                pl.BlockSpec((c2, 1), const),
                pl.BlockSpec((c2, 1), const),
                pl.BlockSpec(w3.shape, const),
            ],
            out_specs=pl.BlockSpec((None, 1, tile_p), lambda i, j: (i, 0, j)),
        ),
        compiler_params=pltpu.CompilerParams(
            dimension_semantics=("parallel", "parallel")),
    )(x_cp, w1, b1, w2, scale, shift, w3)

    return out_cp.reshape(n, 1, h, w)


def init_params(key, input_nc, ndf):
    """Deterministic synthetic params.

    PyTorch Conv2d weight (Cout, Cin, 1, 1) maps directly to (Cout, Cin) here
    (channel-major layout: no transpose needed).
    """
    k1, k2, k3 = jax.random.split(key, 3)
    w1 = 0.1 * jax.random.normal(k1, (ndf, input_nc), jnp.float32)
    b1 = 0.01 * jnp.ones((ndf, 1), jnp.float32)
    w2 = 0.1 * jax.random.normal(k2, (2 * ndf, ndf), jnp.float32)    # bias=False
    gamma = jnp.ones((2 * ndf, 1), jnp.float32)                       # BN weight
    beta = jnp.zeros((2 * ndf, 1), jnp.float32)                       # BN bias
    w3 = 0.1 * jax.random.normal(k3, (2 * ndf, 1), jnp.float32)       # bias=False
    return (w1, b1, w2, gamma, beta, w3)


def reference_forward(x_nchw, params):
    """Pure-JAX reference (PyTorch training-mode BatchNorm, biased variance)."""
    w1, b1, w2, gamma, beta, w3 = params
    n, cin, h, w = x_nchw.shape
    x = x_nchw.reshape(n, cin, h * w)
    h1 = jnp.einsum('oc,ncp->nop', w1, x) + b1[None]
    h1 = jnp.where(h1 >= 0, h1, _SLOPE * h1)
    h2 = jnp.einsum('oc,ncp->nop', w2, h1)
    mean = jnp.mean(h2, axis=(0, 2), keepdims=True)
    var = jnp.mean((h2 - mean) ** 2, axis=(0, 2), keepdims=True)
    h2n = (h2 - mean) * lax.rsqrt(var + _EPS) * gamma[None] + beta[None]
    h2n = jnp.where(h2n >= 0, h2n, _SLOPE * h2n)
    out = jnp.einsum('co,ncp->nop', w3, h2n)
    return out.reshape(n, 1, h, w)


if __name__ == "__main__":
    key = jax.random.PRNGKey(0)
    kx, kp = jax.random.split(key)

    N, Cin, H, W = 2, 4, 16, 16
    ndf = 8
    x = jax.random.normal(kx, (N, Cin, H, W), jnp.float32)
    params = init_params(kp, Cin, ndf)

    # max_tile_p=128 forces 2 pixel tiles per image so both grid axes are exercised.
    fwd = jax.jit(functools.partial(pixel_discriminator, params=params,
                                    max_tile_p=128))
    out = jax.block_until_ready(fwd(x))

    assert out.shape == (N, 1, H, W), out.shape
    assert bool(jnp.all(jnp.isfinite(out)))

    ref = reference_forward(x, params)
    err = float(jnp.max(jnp.abs(out - ref)))
    assert bool(jnp.allclose(out, ref, rtol=5e-4, atol=5e-4)), err

    print("KERNEL_OK")
</pallas_src>

<mosaic_0001>
module attributes {stable_mosaic.version = 11 : i64} {
  func.func @_stats_kernel(%arg0: i32, %arg1: i32, %arg2: memref<1x4x128xf32, #tpu.memory_space<vmem>>, %arg3: memref<8x4xf32, #tpu.memory_space<vmem>>, %arg4: memref<8x1xf32, #tpu.memory_space<vmem>>, %arg5: memref<16x8xf32, #tpu.memory_space<vmem>>, %arg6: memref<16x1xf32, #tpu.memory_space<vmem>>, %arg7: memref<16x1xf32, #tpu.memory_space<vmem>>) attributes {dimension_semantics = [#tpu.dimension_semantics<arbitrary>, #tpu.dimension_semantics<arbitrary>], iteration_bounds = array<i64: 2, 2>, scalar_prefetch = 0 : i64, scratch_operands = 0 : i64, tpu.core_type = #tpu.core_type<tc>, window_params = [{transform_indices = @transform_0, window_bounds = array<i64: 1, 4, 128>}, {pipeline_mode = #tpu.pipeline_mode<synchronous>, transform_indices = @transform_1, window_bounds = array<i64: 8, 4>}, {pipeline_mode = #tpu.pipeline_mode<synchronous>, transform_indices = @transform_2, window_bounds = array<i64: 8, 1>}, {pipeline_mode = #tpu.pipeline_mode<synchronous>, transform_indices = @transform_3, window_bounds = array<i64: 16, 8>}, {pipeline_mode = #tpu.pipeline_mode<synchronous>, transform_indices = @transform_4, window_bounds = array<i64: 16, 1>}, {pipeline_mode = #tpu.pipeline_mode<synchronous>, transform_indices = @transform_5, window_bounds = array<i64: 16, 1>}]} {
    %c0_i32 = arith.constant 0 : i32
    %0 = arith.cmpi eq, %arg0, %c0_i32 : i32
    %c0_i32_0 = arith.constant 0 : i32
    %1 = arith.cmpi eq, %arg1, %c0_i32_0 : i32
    %2 = arith.andi %0, %1 : i1
    %3 = arith.extui %2 : i1 to i32
    %c0_i32_1 = arith.constant 0 : i32
    %4 = arith.cmpi ne, %3, %c0_i32_1 : i32
    scf.if %4 {
      %cst_23 = arith.constant 0.000000e+00 : f32
      %30 = vector.broadcast %cst_23 : f32 to vector<16x1xf32>
      %c0_24 = arith.constant 0 : index
      %c0_25 = arith.constant 0 : index
      %31 = vector.load %arg6[%c0_24, %c0_25] : memref<16x1xf32, #tpu.memory_space<vmem>>, vector<16x1xf32>
      tpu.vector_store %arg6[%c0_24, %c0_25], %30 {strides = array<i32>} : memref<16x1xf32, #tpu.memory_space<vmem>>, vector<16x1xf32>,
      %cst_26 = arith.constant 0.000000e+00 : f32
      %32 = vector.broadcast %cst_26 : f32 to vector<16x1xf32>
      %c0_27 = arith.constant 0 : index
      %c0_28 = arith.constant 0 : index
      %33 = vector.load %arg7[%c0_27, %c0_28] : memref<16x1xf32, #tpu.memory_space<vmem>>, vector<16x1xf32>
      tpu.vector_store %arg7[%c0_27, %c0_28], %32 {strides = array<i32>} : memref<16x1xf32, #tpu.memory_space<vmem>>, vector<16x1xf32>,
    } else {
    }
    %c0 = arith.constant 0 : index
    %c0_2 = arith.constant 0 : index
    %c0_3 = arith.constant 0 : index
    %5 = vector.load %arg2[%c0, %c0_2, %c0_3] : memref<1x4x128xf32, #tpu.memory_space<vmem>>, vector<1x4x128xf32>
    %6 = vector.shape_cast %5 : vector<1x4x128xf32> to vector<4x128xf32>
    %c0_4 = arith.constant 0 : index
    %c0_5 = arith.constant 0 : index
    %7 = vector.load %arg3[%c0_4, %c0_5] : memref<8x4xf32, #tpu.memory_space<vmem>>, vector<8x4xf32>
    %cst = arith.constant dense<0.000000e+00> : vector<8x128xf32>
    %8 = tpu.matmul %7, %6, %cst {dimension_numbers = #tpu.dot_dimension_numbers<[1], [0], [0], [1], [0, 0, 1, 1], [], []>} : vector<8x4xf32>, vector<4x128xf32>, vector<8x128xf32> -> vector<8x128xf32>
    %c0_6 = arith.constant 0 : index
    %c0_7 = arith.constant 0 : index
    %9 = vector.load %arg4[%c0_6, %c0_7] : memref<8x1xf32, #tpu.memory_space<vmem>>, vector<8x1xf32>
    %10 = vector.broadcast %9 : vector<8x1xf32> to vector<8x128xf32>
    %11 = arith.addf %8, %10 : vector<8x128xf32>
    %cst_8 = arith.constant 0.000000e+00 : f32
    %12 = vector.broadcast %cst_8 : f32 to vector<8x128xf32>
    %13 = arith.cmpf oge, %11, %12 : vector<8x128xf32>
    %cst_9 = arith.constant 2.000000e-01 : f32
    %14 = vector.broadcast %cst_9 : f32 to vector<8x128xf32>
    %15 = arith.mulf %14, %11 : vector<8x128xf32>
    %16 = arith.select %13, %11, %15 : vector<8x128xi1>, vector<8x128xf32>
    %c0_10 = arith.constant 0 : index
    %c0_11 = arith.constant 0 : index
    %17 = vector.load %arg5[%c0_10, %c0_11] : memref<16x8xf32, #tpu.memory_space<vmem>>, vector<16x8xf32>
    %cst_12 = arith.constant dense<0.000000e+00> : vector<16x128xf32>
    %18 = tpu.matmul %17, %16, %cst_12 {dimension_numbers = #tpu.dot_dimension_numbers<[1], [0], [0], [1], [0, 0, 1, 1], [], []>} : vector<16x8xf32>, vector<8x128xf32>, vector<16x128xf32> -> vector<16x128xf32>
    %c0_13 = arith.constant 0 : index
    %c0_14 = arith.constant 0 : index
    %19 = vector.load %arg6[%c0_13, %c0_14] : memref<16x1xf32, #tpu.memory_space<vmem>>, vector<16x1xf32>
    %cst_15 = arith.constant dense<0.000000e+00> : vector<16xf32>
    %20 = vector.multi_reduction <add>, %18, %cst_15 [1] : vector<16x128xf32> to vector<16xf32>
    %21 = vector.shape_cast %20 : vector<16xf32> to vector<16x1xf32>
    %22 = arith.addf %19, %21 : vector<16x1xf32>
    %c0_16 = arith.constant 0 : index
    %c0_17 = arith.constant 0 : index
    %23 = vector.load %arg6[%c0_16, %c0_17] : memref<16x1xf32, #tpu.memory_space<vmem>>, vector<16x1xf32>
    tpu.vector_store %arg6[%c0_16, %c0_17], %22 {strides = array<i32>} : memref<16x1xf32, #tpu.memory_space<vmem>>, vector<16x1xf32>,
    %c0_18 = arith.constant 0 : index
    %c0_19 = arith.constant 0 : index
    %24 = vector.load %arg7[%c0_18, %c0_19] : memref<16x1xf32, #tpu.memory_space<vmem>>, vector<16x1xf32>
    %25 = arith.mulf %18, %18 : vector<16x128xf32>
    %cst_20 = arith.constant dense<0.000000e+00> : vector<16xf32>
    %26 = vector.multi_reduction <add>, %25, %cst_20 [1] : vector<16x128xf32> to vector<16xf32>
    %27 = vector.shape_cast %26 : vector<16xf32> to vector<16x1xf32>
    %28 = arith.addf %24, %27 : vector<16x1xf32>
    %c0_21 = arith.constant 0 : index
    %c0_22 = arith.constant 0 : index
    %29 = vector.load %arg7[%c0_21, %c0_22] : memref<16x1xf32, #tpu.memory_space<vmem>>, vector<16x1xf32>
    tpu.vector_store %arg7[%c0_21, %c0_22], %28 {strides = array<i32>} : memref<16x1xf32, #tpu.memory_space<vmem>>, vector<16x1xf32>,
    return
  }
  func.func @transform_0(%arg0: i32, %arg1: i32) -> (i32, i32, i32) {
    %c0_i32 = arith.constant 0 : i32
    %c0_i32_0 = arith.constant 0 : i32
    return %arg0, %c0_i32, %arg1 : i32, i32, i32
  }
  func.func @transform_1(%arg0: i32, %arg1: i32) -> (i32, i32) {
    %c0_i32 = arith.constant 0 : i32
    %c0_i32_0 = arith.constant 0 : i32
    %c0_i32_1 = arith.constant 0 : i32
    return %c0_i32, %c0_i32_0 : i32, i32
  }
  func.func @transform_2(%arg0: i32, %arg1: i32) -> (i32, i32) {
    %c0_i32 = arith.constant 0 : i32
    %c0_i32_0 = arith.constant 0 : i32
    %c0_i32_1 = arith.constant 0 : i32
    return %c0_i32, %c0_i32_0 : i32, i32
  }
  func.func @transform_3(%arg0: i32, %arg1: i32) -> (i32, i32) {
    %c0_i32 = arith.constant 0 : i32
    %c0_i32_0 = arith.constant 0 : i32
    %c0_i32_1 = arith.constant 0 : i32
    return %c0_i32, %c0_i32_0 : i32, i32
  }
  func.func @transform_4(%arg0: i32, %arg1: i32) -> (i32, i32) {
    %c0_i32 = arith.constant 0 : i32
    %c0_i32_0 = arith.constant 0 : i32
    %c0_i32_1 = arith.constant 0 : i32
    return %c0_i32, %c0_i32_0 : i32, i32
  }
  func.func @transform_5(%arg0: i32, %arg1: i32) -> (i32, i32) {
    %c0_i32 = arith.constant 0 : i32
    %c0_i32_0 = arith.constant 0 : i32
    %c0_i32_1 = arith.constant 0 : i32
    return %c0_i32, %c0_i32_0 : i32, i32
  }
}

module attributes {stable_mosaic.version = 11 : i64} {
  func.func @_apply_kernel(%arg0: i32, %arg1: i32, %arg2: memref<1x4x128xf32, #tpu.memory_space<vmem>>, %arg3: memref<8x4xf32, #tpu.memory_space<vmem>>, %arg4: memref<8x1xf32, #tpu.memory_space<vmem>>, %arg5: memref<16x8xf32, #tpu.memory_space<vmem>>, %arg6: memref<16x1xf32, #tpu.memory_space<vmem>>, %arg7: memref<16x1xf32, #tpu.memory_space<vmem>>, %arg8: memref<16x1xf32, #tpu.memory_space<vmem>>, %arg9: memref<1x1x128xf32, #tpu.memory_space<vmem>>) attributes {dimension_semantics = [#tpu.dimension_semantics<parallel>, #tpu.dimension_semantics<parallel>], iteration_bounds = array<i64: 2, 2>, scalar_prefetch = 0 : i64, scratch_operands = 0 : i64, tpu.core_type = #tpu.core_type<tc>, window_params = [{transform_indices = @transform_0, window_bounds = array<i64: 1, 4, 128>}, {pipeline_mode = #tpu.pipeline_mode<synchronous>, transform_indices = @transform_1, window_bounds = array<i64: 8, 4>}, {pipeline_mode = #tpu.pipeline_mode<synchronous>, transform_indices = @transform_2, window_bounds = array<i64: 8, 1>}, {pipeline_mode = #tpu.pipeline_mode<synchronous>, transform_indices = @transform_3, window_bounds = array<i64: 16, 8>}, {pipeline_mode = #tpu.pipeline_mode<synchronous>, transform_indices = @transform_4, window_bounds = array<i64: 16, 1>}, {pipeline_mode = #tpu.pipeline_mode<synchronous>, transform_indices = @transform_5, window_bounds = array<i64: 16, 1>}, {pipeline_mode = #tpu.pipeline_mode<synchronous>, transform_indices = @transform_6, window_bounds = array<i64: 16, 1>}, {transform_indices = @transform_7, window_bounds = array<i64: 1, 1, 128>}]} {
    %c0 = arith.constant 0 : index
    %c0_0 = arith.constant 0 : index
    %c0_1 = arith.constant 0 : index
    %0 = vector.load %arg2[%c0, %c0_0, %c0_1] : memref<1x4x128xf32, #tpu.memory_space<vmem>>, vector<1x4x128xf32>
    %1 = vector.shape_cast %0 : vector<1x4x128xf32> to vector<4x128xf32>
    %c0_2 = arith.constant 0 : index
    %c0_3 = arith.constant 0 : index
    %2 = vector.load %arg3[%c0_2, %c0_3] : memref<8x4xf32, #tpu.memory_space<vmem>>, vector<8x4xf32>
    %cst = arith.constant dense<0.000000e+00> : vector<8x128xf32>
    %3 = tpu.matmul %2, %1, %cst {dimension_numbers = #tpu.dot_dimension_numbers<[1], [0], [0], [1], [0, 0, 1, 1], [], []>} : vector<8x4xf32>, vector<4x128xf32>, vector<8x128xf32> -> vector<8x128xf32>
    %c0_4 = arith.constant 0 : index
    %c0_5 = arith.constant 0 : index
    %4 = vector.load %arg4[%c0_4, %c0_5] : memref<8x1xf32, #tpu.memory_space<vmem>>, vector<8x1xf32>
    %5 = vector.broadcast %4 : vector<8x1xf32> to vector<8x128xf32>
    %6 = arith.addf %3, %5 : vector<8x128xf32>
    %cst_6 = arith.constant 0.000000e+00 : f32
    %7 = vector.broadcast %cst_6 : f32 to vector<8x128xf32>
    %8 = arith.cmpf oge, %6, %7 : vector<8x128xf32>
    %cst_7 = arith.constant 2.000000e-01 : f32
    %9 = vector.broadcast %cst_7 : f32 to vector<8x128xf32>
    %10 = arith.mulf %9, %6 : vector<8x128xf32>
    %11 = arith.select %8, %6, %10 : vector<8x128xi1>, vector<8x128xf32>
    %c0_8 = arith.constant 0 : index
    %c0_9 = arith.constant 0 : index
    %12 = vector.load %arg5[%c0_8, %c0_9] : memref<16x8xf32, #tpu.memory_space<vmem>>, vector<16x8xf32>
    %cst_10 = arith.constant dense<0.000000e+00> : vector<16x128xf32>
    %13 = tpu.matmul %12, %11, %cst_10 {dimension_numbers = #tpu.dot_dimension_numbers<[1], [0], [0], [1], [0, 0, 1, 1], [], []>} : vector<16x8xf32>, vector<8x128xf32>, vector<16x128xf32> -> vector<16x128xf32>
    %c0_11 = arith.constant 0 : index
    %c0_12 = arith.constant 0 : index
    %14 = vector.load %arg6[%c0_11, %c0_12] : memref<16x1xf32, #tpu.memory_space<vmem>>, vector<16x1xf32>
    %15 = vector.broadcast %14 : vector<16x1xf32> to vector<16x128xf32>
    %16 = arith.mulf %13, %15 : vector<16x128xf32>
    %c0_13 = arith.constant 0 : index
    %c0_14 = arith.constant 0 : index
    %17 = vector.load %arg7[%c0_13, %c0_14] : memref<16x1xf32, #tpu.memory_space<vmem>>, vector<16x1xf32>
    %18 = vector.broadcast %17 : vector<16x1xf32> to vector<16x128xf32>
    %19 = arith.addf %16, %18 : vector<16x128xf32>
    %cst_15 = arith.constant 0.000000e+00 : f32
    %20 = vector.broadcast %cst_15 : f32 to vector<16x128xf32>
    %21 = arith.cmpf oge, %19, %20 : vector<16x128xf32>
    %cst_16 = arith.constant 2.000000e-01 : f32
    %22 = vector.broadcast %cst_16 : f32 to vector<16x128xf32>
    %23 = arith.mulf %22, %19 : vector<16x128xf32>
    %24 = arith.select %21, %19, %23 : vector<16x128xi1>, vector<16x128xf32>
    %c0_17 = arith.constant 0 : index
    %c0_18 = arith.constant 0 : index
    %25 = vector.load %arg8[%c0_17, %c0_18] : memref<16x1xf32, #tpu.memory_space<vmem>>, vector<16x1xf32>
    %26 = vector.broadcast %25 : vector<16x1xf32> to vector<16x128xf32>
    %27 = arith.mulf %24, %26 : vector<16x128xf32>
    %cst_19 = arith.constant dense<0.000000e+00> : vector<128xf32>
    %28 = vector.multi_reduction <add>, %27, %cst_19 [0] : vector<16x128xf32> to vector<128xf32>
    %29 = vector.shape_cast %28 : vector<128xf32> to vector<1x128xf32>
    %c0_20 = arith.constant 0 : index
    %c0_21 = arith.constant 0 : index
    %c0_22 = arith.constant 0 : index
    %30 = vector.load %arg9[%c0_20, %c0_21, %c0_22] : memref<1x1x128xf32, #tpu.memory_space<vmem>>, vector<1x1x128xf32>
    %31 = vector.shape_cast %30 : vector<1x1x128xf32> to vector<1x128xf32>
    %32 = vector.shape_cast %29 : vector<1x128xf32> to vector<1x1x128xf32>
    tpu.vector_store %arg9[%c0_20, %c0_21, %c0_22], %32 {strides = array<i32>} : memref<1x1x128xf32, #tpu.memory_space<vmem>>, vector<1x1x128xf32>,
    return
  }
  func.func @transform_0(%arg0: i32, %arg1: i32) -> (i32, i32, i32) {
    %c0_i32 = arith.constant 0 : i32
    %c0_i32_0 = arith.constant 0 : i32
    return %arg0, %c0_i32, %arg1 : i32, i32, i32
  }
  func.func @transform_1(%arg0: i32, %arg1: i32) -> (i32, i32) {
    %c0_i32 = arith.constant 0 : i32
    %c0_i32_0 = arith.constant 0 : i32
    %c0_i32_1 = arith.constant 0 : i32
    return %c0_i32, %c0_i32_0 : i32, i32
  }
  func.func @transform_2(%arg0: i32, %arg1: i32) -> (i32, i32) {
    %c0_i32 = arith.constant 0 : i32
    %c0_i32_0 = arith.constant 0 : i32
    %c0_i32_1 = arith.constant 0 : i32
    return %c0_i32, %c0_i32_0 : i32, i32
  }
  func.func @transform_3(%arg0: i32, %arg1: i32) -> (i32, i32) {
    %c0_i32 = arith.constant 0 : i32
    %c0_i32_0 = arith.constant 0 : i32
    %c0_i32_1 = arith.constant 0 : i32
    return %c0_i32, %c0_i32_0 : i32, i32
  }
  func.func @transform_4(%arg0: i32, %arg1: i32) -> (i32, i32) {
    %c0_i32 = arith.constant 0 : i32
    %c0_i32_0 = arith.constant 0 : i32
    %c0_i32_1 = arith.constant 0 : i32
    return %c0_i32, %c0_i32_0 : i32, i32
  }
  func.func @transform_5(%arg0: i32, %arg1: i32) -> (i32, i32) {
    %c0_i32 = arith.constant 0 : i32
    %c0_i32_0 = arith.constant 0 : i32
    %c0_i32_1 = arith.constant 0 : i32
    return %c0_i32, %c0_i32_0 : i32, i32
  }
  func.func @transform_6(%arg0: i32, %arg1: i32) -> (i32, i32) {
    %c0_i32 = arith.constant 0 : i32
    %c0_i32_0 = arith.constant 0 : i32
    %c0_i32_1 = arith.constant 0 : i32
    return %c0_i32, %c0_i32_0 : i32, i32
  }
  func.func @transform_7(%arg0: i32, %arg1: i32) -> (i32, i32, i32) {
    %c0_i32 = arith.constant 0 : i32
    %c0_i32_0 = arith.constant 0 : i32
    return %arg0, %c0_i32, %arg1 : i32, i32, i32
  }
}

</mosaic_0001>

<bundles_post_ra>
// kernel: pixel_discriminator.2
= control target key start
LH: loop header
LB: loop body
LE: loop exit
PB: predicated region body
PF: predicated region fallthrough
CT: control target
= control target key end

     0   :  { %s635_s18 = smov 0   ;;  %s637_s19 = smov 0   ;;  %s731_s0 = inlined_call_operand.vmem [shape: f32[2,4,256], index: 0, kind: input, shape index: {}]   ;;  %s732_s1 = inlined_call_operand.vmem [shape: f32[8,4], index: 1, kind: input, shape index: {}]   ;;  %s733_s2 = inlined_call_operand.vmem [shape: f32[8,1], index: 2, kind: input, shape index: {}]   ;;  %s734_s3 = inlined_call_operand.vmem [shape: f32[16,8], index: 3, kind: input, shape index: {}]   ;;  %s735_s4 = inlined_call_operand.vmem [shape: f32[16,1], index: 4, kind: output, shape index: {0}]   ;;  %s736_s5 = inlined_call_operand.vmem [shape: f32[16,1], index: 5, kind: output, shape index: {1}]  }
   0x1   :  { %s639_s20 = smov 0   ;;  %s641_s21 = smov 0  }
   0x2   :  { %s643_s22 = smov 0  }
   0x3 LB: > { %s25_s23 = sadd.s32 1, %s591_s20  ;;  %s28_s24 = sadd.s32 1, %s595_s21  ;;  %s599_s22 = sphi %s643_s22, %s16_s22   ;;  %s595_s21 = sphi %s641_s21, %s740_s21   ;;  %s591_s20 = sphi %s639_s20, %s739_s20   ;;  %s587_s19 = sphi %s637_s19, %s738_s19   ;;  %s583_s18 = sphi %s635_s18, %s737_s18  }
   0x4   : > { %p26_p0 = scmp.ge.s32.totalorder %s25_s23, 2  ;;  %p492_p1 = scmp.ge.s32.totalorder %s599_s22, 1 }
   0x5   : > { %p197_p2 = scmp.lt.s32.totalorder %s599_s22, 5 }
   0x6   : > { %s742_s23 = smov (%p26_p0, %s25_s23), 0  ;;  %s744_s24 = smov (!%p26_p0, %s28_s24), %s595_s21 }
   0x7   : > { %p198_p3 = pnand %p492_p1, %p197_p2  ;;  %p30_p4 = scmp.ge.s32.totalorder %s744_s24, 2 }
   0x8   : > { %p223_p5 = scmp.lt.s32.totalorder (!%p198_p3), %s587_s19, 1  ;;  %p225_p6 = scmp.lt.s32.totalorder (!%p198_p3), %s583_s18, 1 }
   0x9   : > { %s746_s24 = smov (%p30_p4, %s744_s24), 0  ;;  %201 = sbr.rel (%p198_p3) target bundleno = 611 (0x263), region = 36 }
   0xa   : > { %p231_p7 = scmp.eq.s32.totalorder (!%p198_p3), %s587_s19, 0  ;;  %p232_p8 = scmp.eq.s32.totalorder (!%p198_p3), %s583_s18, 0 }
   0xc   : > { %p233_p9 = pnand (!%p198_p3), %p232_p8, %p231_p7 }
  0x10   : > { %s748_s19 = smov (!%p223_p5, %s587_s19), 1  ;;  %s750_s18 = smov (!%p225_p6, %s583_s18), 1 }
  0x11   : > { %s493_s25 = sshll.u32 %s748_s19, 1  ;;  %236 = sbr.rel (%p233_p9) target bundleno = 24 (0x18), region = 40  ;;  %vm237_vm0 = vcmask (!%p233_p9), 7168   ;;  %v601_v0 = vmov (!%p233_p9), 0.0  }
  0x12   : > { %s228_s26 = sadd.s32 %s493_s25, %s750_s18  ;;  %238 = vst.msk [vmem:[%s735_s4] sm:$0xff] (!%p233_p9), %vm237_vm0, %v601_v0  ;;  %239 = vst.msk [vmem:[%s735_s4 + $0x8] sm:$0xff] (!%p233_p9), %vm237_vm0, %v601_v0 }
  0x13   : > { %s494_s27 = sshll.u32 %s228_s26, 2  ;;  %240 = vst.msk [vmem:[%s736_s5] sm:$0xff] (!%p233_p9), %vm237_vm0, %v601_v0  ;;  %241 = vst.msk [vmem:[%s736_s5 + $0x8] sm:$0xff] (!%p233_p9), %vm237_vm0, %v601_v0 }
  0x14   : > { %s230_s30 = scalar_lea.vmem %s731_s0, %s494_s27 }
  0x18 PF: > { %v242_v1 = vld [vmem:[%s230_s30] sm:$0xf]  ;;  %vm254_vm1 = vcmask 1043456   ;;  %v602_v3 = vmov 0.0   ;;  %vm603_vm2 = vmmov 0   ;;  %vm250_vm3 = vcmask 31744  }
  0x19   : > { %v243_v2 = vld [vmem:[%s732_s1] sm:$0xff]  ;;  %506 = vmatprep.subr.mxu0 %v602_v3  ;;  %508 = vmatprep.mubr.msk.f32.mxu0 %vm603_vm2, %v602_v3  ;;  %v604_v5 = vmov 0   ;;  %vm333_vm4 = vcmask 64512   ;;  %v332_v13 = vld [vmem:[%s734_s3 + $0x8] sm:$0xff]  ;;  %vm423_vm6 = vcmask 7168  }
  0x1a   : > { %v244_v4 = vld [vmem:[%s733_s2] sm:$0xff]  ;;  %507 = vmatpush3.msk.msra.mxu0 %vm254_vm1, %v242_v1  ;;  %560 = vset.pattern.permute.xlu0 %v604_v5  ;;  %v416_v18 = vld [vmem:[%s735_s4 + $0x8] sm:$0xff] }
  0x1b   : > { %509 = vmatmul.mubr.msk.f32.vlgmr.msra.gmra.mrb[0].mxu0 %vm250_vm3, %v243_v2  ;;  %247 = vperm.xlu0 %560, %v244_v4   ;;  %v331_v6 = vld [vmem:[%s734_s3] sm:$0xff]  ;;  %v427_v27 = vld [vmem:[%s736_s5 + $0x8] sm:$0xff] }
  0x1c   : > { %513 = vmatprep.mubr.msk.f32.mxu1 %vm333_vm4, %v331_v6  ;;  %v415_v19 = vld [vmem:[%s735_s4] sm:$0xff] }
  0x1d   : > { %v426_v24 = vld [vmem:[%s736_s5] sm:$0xff] }
  0x9a   : > { %v248_v7 = vpop.permute.xlu0 %247 }
  0xee   : > { %v324_v8 = vpop.f32.mrb[0].mxu0 }
  0xef   : > { %v325_v9 = vadd.f32 %v324_v8, %v248_v7  ;;  %v510_v10 = vpop.f32.mrb[1].mxu0 }
  0xf1   : > { %vm328_vm5 = vcmp.ge.f32.partialorder %v325_v9, 0.0  ;;  %v329_v11 = vmul.f32 0.2, %v325_v9 }
  0xf3   : > { %v330_v12 = vsel %vm328_vm5, %v325_v9, %v329_v11 }
  0xf4   : > { %511 = vmatprep.subr.mxu1 %v330_v12 }
  0xf5   : > { %512 = vmatpush3.msra.mxu1 %v330_v12 }
  0xf6   : > { %514 = vmatmul.mubr.msk.f32.vlgmr.msra.gmra.mrb[0].mxu1 %vm333_vm4, %v332_v13 }
 0x1c9   : > { %v515_v14 = vpop.f32.mrb[0].mxu1 }
 0x1ca   : > { %419 = vadd.xlane.f32.xlu1 %v515_v14  ;;  %v406_v15 = vpop.f32.mrb[1].mxu1  ;;  %v429_v17 = vmul.f32 %v515_v14, %v515_v14 }
 0x1cb   : > { %v428_v16 = vmul.f32 %v406_v15, %v406_v15  ;;  %417 = vadd.xlane.f32.xlu0 %v406_v15 }
 0x1ce   : > { %430 = vadd.xlane.f32.xlu1 %v428_v16 }
 0x1d2   : > { %432 = vadd.xlane.f32.xlu1 %v429_v17 }
 0x257   : > { %v420_v20 = vpop.xlane.xlu1 %419 }
 0x258   : > { %v422_v21 = vadd.f32 %v420_v20, %v416_v18  ;;  %v418_v22 = vpop.xlane.xlu0 %417 }
 0x259   : > { %v421_v23 = vadd.f32 %v418_v22, %v415_v19 }
 0x25a   : > { %425 = vst.msk [vmem:[%s735_s4 + $0x8] sm:$0xff] %vm423_vm6, %v422_v21 }
 0x25b   : > { %424 = vst.msk [vmem:[%s735_s4] sm:$0xff] %vm423_vm6, %v421_v23  ;;  %v431_v25 = vpop.xlane.xlu1 %430 }
 0x25c   : > { %v434_v26 = vadd.f32 %v431_v25, %v426_v24 }
 0x25e   : > { %436 = vst.msk [vmem:[%s736_s5] sm:$0xff] %vm423_vm6, %v434_v26 }
 0x25f   : > { %v433_v28 = vpop.xlane.xlu1 %432 }
 0x260   : > { %v435_v29 = vadd.f32 %v433_v28, %v427_v27 }
 0x262   : > { %437 = vst.msk [vmem:[%s736_s5 + $0x8] sm:$0xff] %vm423_vm6, %v435_v29 }
 0x263 PF: > { %s16_s22 = sadd.s32 1, %s599_s22   ;;  %s737_s18 = smov %s591_s20 }
 0x264   : > { %p13_p10 = scmp.ge.s32.totalorder %s16_s22, 6   ;;  %s738_s19 = smov %s595_s21 }
 0x265   : > { %s739_s20 = smov %s742_s23  ;;  %s740_s21 = smov %s746_s24 }
 0x266   :  { %15 = sbr.rel (!%p13_p10) target bundleno = 3 (0x3), region = 74 }

// kernel: pixel_discriminator.3
= control target key start
LH: loop header
LB: loop body
LE: loop exit
PB: predicated region body
PF: predicated region fallthrough
CT: control target
= control target key end

     0   :  { %s774_s24 = smov 0   ;;  %s776_s25 = smov 0   ;;  %s861_s0 = inlined_call_operand.vmem [shape: f32[2,4,256], index: 0, kind: input, shape index: {}]   ;;  %s862_s1 = inlined_call_operand.vmem [shape: f32[8,4], index: 1, kind: input, shape index: {}]   ;;  %s863_s2 = inlined_call_operand.vmem [shape: f32[8,1], index: 2, kind: input, shape index: {}]   ;;  %s864_s3 = inlined_call_operand.vmem [shape: f32[16,8], index: 3, kind: input, shape index: {}]   ;;  %s865_s4 = inlined_call_operand.vmem [shape: f32[16,1], index: 4, kind: input, shape index: {}]   ;;  %s866_s5 = inlined_call_operand.vmem [shape: f32[16,1], index: 5, kind: input, shape index: {}]   ;;  %s867_s6 = inlined_call_operand.vmem [shape: f32[16,1], index: 6, kind: input, shape index: {}]   ;;  %s868_s7 = inlined_call_operand.vmem [shape: f32[2,1,256], index: 7, kind: output, shape index: {}]  }
   0x1   :  { %s778_s26 = smov 0   ;;  %s780_s27 = smov 0  }
   0x2   :  { %s782_s28 = smov 0  }
   0x3 LB: > { %s26_s29 = sadd.s32 1, %s721_s26  ;;  %s29_s30 = sadd.s32 1, %s725_s27  ;;  %s729_s28 = sphi %s782_s28, %s17_s28   ;;  %s725_s27 = sphi %s780_s27, %s872_s27   ;;  %s721_s26 = sphi %s778_s26, %s871_s26   ;;  %s717_s25 = sphi %s776_s25, %s870_s25   ;;  %s713_s24 = sphi %s774_s24, %s869_s24  }
   0x4   : > { %p27_p0 = scmp.ge.s32.totalorder %s26_s29, 2  ;;  %p621_p1 = scmp.ge.s32.totalorder %s729_s28, 1 }
   0x5   : > { %p256_p2 = scmp.lt.s32.totalorder %s729_s28, 5 }
   0x6   : > { %s874_s29 = smov (%p27_p0, %s26_s29), 0  ;;  %s876_s30 = smov (!%p27_p0, %s29_s30), %s725_s27 }
   0x7   : > { %p257_p3 = pnand %p621_p1, %p256_p2  ;;  %p31_p4 = scmp.ge.s32.totalorder %s876_s30, 2 }
   0x8   : > { %p293_p5 = scmp.lt.s32.totalorder (!%p257_p3), %s717_s25, 1  ;;  %p295_p6 = scmp.lt.s32.totalorder (!%p257_p3), %s713_s24, 1  ;;  %v731_v0 = vmov (!%p257_p3), 0.0   ;;  %vm732_vm0 = vmmov (!%p257_p3), 0   ;;  %v310_v1 = vld [vmem:[%s863_s2] sm:$0xff] (!%p257_p3)  ;;  %v733_v2 = vmov (!%p257_p3), 0  }
   0x9   : > { %s878_s30 = smov (%p31_p4, %s876_s30), 0  ;;  %260 = sbr.rel (%p257_p3) target bundleno = 479 (0x1df), region = 48 }
   0xa   : > { %636 = vmatprep.subr.mxu0 (!%p257_p3), %v731_v0  ;;  %638 = vmatprep.mubr.msk.f32.mxu0 (!%p257_p3), %vm732_vm0, %v731_v0  ;;  %v481_v3 = vld [vmem:[%s865_s4] sm:$0xff] (!%p257_p3)  ;;  %vm320_vm1 = vcmask (!%p257_p3), 1043456   ;;  %vm316_vm2 = vcmask (!%p257_p3), 31744   ;;  %v496_v6 = vld [vmem:[%s866_s5 + $0x8] sm:$0xff] (!%p257_p3)  ;;  %vm399_vm3 = vcmask (!%p257_p3), 64512  }
   0xb   : > { %689 = vset.pattern.permute.xlu0 (!%p257_p3), %v733_v2  ;;  %690 = vset.pattern.permute.xlu1 (!%p257_p3), %v733_v2  ;;  %v309_v4 = vld [vmem:[%s862_s1] sm:$0xff] (!%p257_p3)  ;;  %v516_v7 = vld [vmem:[%s867_s6 + $0x8] sm:$0xff] (!%p257_p3) }
   0xc   : > { %313 = vperm.xlu0 (!%p257_p3), %689, %v310_v1   ;;  %v397_v8 = vld [vmem:[%s864_s3] sm:$0xff] (!%p257_p3)  ;;  %v482_v9 = vld [vmem:[%s865_s4 + $0x8] sm:$0xff] (!%p257_p3) }
   0xd   : > { %643 = vmatprep.mubr.msk.f32.mxu1 (!%p257_p3), %vm399_vm3, %v397_v8  ;;  %490 = vperm.xlu1 (!%p257_p3), %690, %v482_v9   ;;  %v495_v10 = vld [vmem:[%s866_s5] sm:$0xff] (!%p257_p3)  ;;  %v398_v18 = vld [vmem:[%s864_s3 + $0x8] sm:$0xff] (!%p257_p3) }
   0xe   : > { %v515_v11 = vld [vmem:[%s867_s6] sm:$0xff] (!%p257_p3) }
  0x10   : > { %s880_s25 = smov (!%p293_p5, %s717_s25), 1  ;;  %s882_s24 = smov (!%p295_p6, %s713_s24), 1  ;;  %485 = vperm.xlu0 %689, %v481_v3  }
  0x11   : > { %s622_s10 = sshll.u32 %s880_s25, 1  ;;  %499 = vperm.xlu1 %690, %v495_v10  }
  0x12   : > { %s810_s13 = sadd.s32 %s622_s10, %s882_s24 }
  0x13   : > { %s623_s14 = sshll.u32 %s810_s13, 2  ;;  %s307_s19 = scalar_lea.vmem %s868_s7, %s810_s13 }
  0x14   : > { %s300_s17 = scalar_lea.vmem %s861_s0, %s623_s14  ;;  %504 = vperm.xlu0 %689, %v496_v6  }
  0x15   : > { %v308_v5 = vld [vmem:[%s300_s17] sm:$0xf]  ;;  %519 = vperm.xlu1 %690, %v515_v11  }
  0x16   : > { %637 = vmatpush3.msk.msra.mxu0 %vm320_vm1, %v308_v5 }
  0x17   : > { %639 = vmatmul.mubr.msk.f32.vlgmr.msra.gmra.mrb[0].mxu0 %vm316_vm2, %v309_v4 }
  0x18   : > { %524 = vperm.xlu0 %689, %v516_v7  }
  0x8b   : > { %v314_v12 = vpop.permute.xlu0 %313 }
  0x8c   : > { %v491_v20 = vpop.permute.xlu1 %490 }
  0x8f   : > { %v486_v19 = vpop.permute.xlu0 %485 }
  0x90   : > { %v500_v25 = vpop.permute.xlu1 %499 }
  0x93   : > { %v505_v22 = vpop.permute.xlu0 %504 }
  0x94   : > { %v520_v33 = vpop.permute.xlu1 %519 }
  0x97   : > { %v525_v31 = vpop.permute.xlu0 %524 }
  0xea   : > { %v390_v13 = vpop.f32.mrb[0].mxu0 }
  0xeb   : > { %v391_v14 = vadd.f32 %v390_v13, %v314_v12  ;;  %v640_v15 = vpop.f32.mrb[1].mxu0 }
  0xed   : > { %vm394_vm4 = vcmp.ge.f32.partialorder %v391_v14, 0.0  ;;  %v395_v16 = vmul.f32 0.2, %v391_v14 }
  0xef   : > { %v396_v17 = vsel %vm394_vm4, %v391_v14, %v395_v16 }
  0xf0   : > { %641 = vmatprep.subr.mxu1 %v396_v17 }
  0xf1   : > { %642 = vmatpush3.msra.mxu1 %v396_v17 }
  0xf2   : > { %644 = vmatmul.mubr.msk.f32.vlgmr.msra.gmra.mrb[0].mxu1 %vm399_vm3, %v398_v18 }
 0x1c5   : > { %v645_v21 = vpop.f32.mrb[0].mxu1 }
 0x1c6   : > { %v494_v23 = vmul.f32 %v645_v21, %v491_v20  ;;  %v472_v24 = vpop.f32.mrb[1].mxu1 }
 0x1c7   : > { %v493_v26 = vmul.f32 %v486_v19, %v472_v24 }
 0x1c8   : > { %v508_v27 = vadd.f32 %v505_v22, %v494_v23 }
 0x1c9   : > { %v507_v28 = vadd.f32 %v500_v25, %v493_v26 }
 0x1ca   : > { %vm510_vm5 = vcmp.ge.f32.partialorder %v508_v27, 0.0  ;;  %v512_v29 = vmul.f32 0.2, %v508_v27 }
 0x1cb   : > { %vm509_vm6 = vcmp.ge.f32.partialorder %v507_v28, 0.0  ;;  %v511_v30 = vmul.f32 0.2, %v507_v28 }
 0x1cc   : > { %v514_v32 = vsel %vm510_vm5, %v508_v27, %v512_v29 }
 0x1cd   : > { %v528_v34 = vmul.f32 %v525_v31, %v514_v32  ;;  %v513_v35 = vsel %vm509_vm6, %v507_v28, %v511_v30 }
 0x1ce   : > { %v527_v36 = vmul.f32 %v520_v33, %v513_v35 }
 0x1d0   : > { %v529_v37 = vadd.f32 %v528_v34, %v527_v36 }
 0x1d2   : > { %v530_v38 = vrot.slane %v529_v37, 4 }
 0x1d4   : > { %v531_v39 = vadd.f32 %v530_v38, %v529_v37 }
 0x1d6   : > { %v532_v40 = vrot.slane %v531_v39, 2 }
 0x1d8   : > { %v533_v41 = vadd.f32 %v532_v40, %v531_v39 }
 0x1da   : > { %v534_v42 = vrot.slane %v533_v41, 1 }
 0x1dc   : > { %v535_v43 = vadd.f32 %v534_v42, %v533_v41 }
 0x1de   : > { %536 = vst [vmem:[%s307_s19] sm:$0x1] %v535_v43 }
 0x1df PF: > { %s17_s28 = sadd.s32 1, %s729_s28   ;;  %s869_s24 = smov %s721_s26 }
 0x1e0   : > { %p14_p7 = scmp.ge.s32.totalorder %s17_s28, 6   ;;  %s870_s25 = smov %s725_s27 }
 0x1e1   : > { %s871_s26 = smov %s874_s29  ;;  %s872_s27 = smov %s878_s30 }
 0x1e2   :  { %16 = sbr.rel (!%p14_p7) target bundleno = 3 (0x3), region = 78 }

</bundles_post_ra>
